<compile_context>
chip_gen: v7x
topology: tpu7x:2x2x1
jax: 0.10.0
libtpu: 0.0.40
codegen_flags: <defaults>
</compile_context>

<pallas_src>
from functools import partial

import jax
import jax.numpy as jnp
from jax.experimental import pallas as pl
from jax.experimental.pallas import tpu as pltpu

LANE = 128
SUBLANE = 8


def _round_up(x, m):
    return (x + m - 1) // m * m


def _vmem_capacity_bytes():
    try:
        return int(pltpu.get_tpu_info().vmem_capacity_bytes)
    except Exception:
        return 64 * 1024 * 1024  # conservative fallback: assume v7x (64 MiB)


def _pick_tile(total, cap):
    """Largest multiple of LANE that divides `total` (a LANE multiple), <= cap."""
    t = max(min(cap, total) // LANE * LANE, LANE)
    while total % t:
        t -= LANE
    return t


# ---------------------------------------------------------------------------
# Fused A-resident kernel: MLP + all prop steps in one launch (A in VMEM once).
# Transposed (H, N) layout; A symmetric => (A @ h)^T == h^T @ A, so every
# matmul's output lane axis is the node axis N.
# ---------------------------------------------------------------------------
def _fused_kernel(xT_ref, w1T_ref, b1_ref, w2T_ref, b2_ref, a_ref, oT_ref, *,
                  prop_step, relu, prop_dtype):
    h = jnp.dot(w1T_ref[...], xT_ref[...], preferred_element_type=jnp.float32)
    h = h + b1_ref[...]                       # BN(eval) folded into W1/b1
    h = jnp.maximum(h, 0.0)                   # ReLU (Dropout eval = identity)
    h = jnp.dot(w2T_ref[...], h, preferred_element_type=jnp.float32)
    h = h + b2_ref[...]
    for _ in range(prop_step):
        if relu:
            h = jnp.maximum(h, 0.0)
        h = jnp.dot(h.astype(prop_dtype), a_ref[...],
                    preferred_element_type=jnp.float32)
    oT_ref[...] = h.astype(oT_ref.dtype)


# ---------------------------------------------------------------------------
# Streaming path kernels (large N): MLP, then per-step tiled propagation.
# ReLU for the *next* prop step is hoisted into the producer's epilogue
# (apply_relu_out), so the prop inner loop has no redundant VPU work.
# ---------------------------------------------------------------------------
def _mlp_kernel(xT_ref, w1T_ref, b1_ref, w2T_ref, b2_ref, oT_ref, *,
                apply_relu_out):
    h = jnp.dot(w1T_ref[...], xT_ref[...], preferred_element_type=jnp.float32)
    h = h + b1_ref[...]
    h = jnp.maximum(h, 0.0)
    h = jnp.dot(w2T_ref[...], h, preferred_element_type=jnp.float32)
    h = h + b2_ref[...]
    if apply_relu_out:
        h = jnp.maximum(h, 0.0)
    oT_ref[...] = h.astype(oT_ref.dtype)


def _prop_kernel(hT_ref, a_ref, oT_ref, acc_ref, *, apply_relu_out):
    k = pl.program_id(1)

    @pl.when(k == 0)
    def _():
        acc_ref[...] = jnp.zeros_like(acc_ref)

    acc_ref[...] += jnp.dot(hT_ref[...], a_ref[...],
                            preferred_element_type=jnp.float32)

    @pl.when(k == pl.num_programs(1) - 1)
    def _():
        out = acc_ref[...]
        if apply_relu_out:
            out = jnp.maximum(out, 0.0)
        oT_ref[...] = out.astype(oT_ref.dtype)


# ---------------------------------------------------------------------------
# Wrapper
# ---------------------------------------------------------------------------
def gcn_no_para_forward(x, a_norm, params, *, prop_step=2, relu=False,
                        prop_dtype=jnp.bfloat16, force_streaming=False):
    """x: (N, F_in) f32, a_norm: (N, N) f32 sym-normalized adjacency.
    Returns (N, H) f32.  prop_dtype controls the A / inter-step hT dtype
    (bf16 default: ~2x less HBM traffic on the dominant N^2 stream)."""
    N, Fin = x.shape
    H = params["w1"].shape[1]
    prop_dtype = jnp.dtype(prop_dtype)

    Fin_p = _round_up(Fin, SUBLANE)          # sublane-aligned only (no 128 pad)
    H_p = _round_up(H, SUBLANE)              # sublane-aligned only (no 128 pad)
    N_p = _round_up(N, LANE)                 # node axis lives on lanes

    vmem_cap = _vmem_capacity_bytes()
    big_vmem = vmem_cap >= 100 * 1024 * 1024            # v5e / v6e (128 MiB)
    vmem_limit = (96 if big_vmem else 48) * 1024 * 1024  # v7x stays <=48 MiB

    # --- Fold eval-mode BatchNorm into Linear1 (no numeric change). ----------
    w1f = params["w1"] * params["bn_scale"][None, :]
    b1f = params["b1"] * params["bn_scale"] + params["bn_shift"]

    w1T = jnp.zeros((H_p, Fin_p), jnp.float32).at[:H, :Fin].set(w1f.T)
    b1c = jnp.zeros((H_p, 1), jnp.float32).at[:H, 0].set(b1f)
    w2T = jnp.zeros((H_p, H_p), jnp.float32).at[:H, :H].set(params["w2"].T)
    b2c = jnp.zeros((H_p, 1), jnp.float32).at[:H, 0].set(params["b2"])

    # --- Node-axis padding only when actually needed (avoid N^2 pad pass). ---
    if Fin_p == Fin and N_p == N:
        xT = x.T
    else:
        xT = jnp.zeros((Fin_p, N_p), jnp.float32).at[:Fin, :N].set(x.T)
    if N_p == N:
        aP = a_norm.astype(prop_dtype)       # pure dtype cast, no pad copy
    else:
        aP = jnp.zeros((N_p, N_p), prop_dtype).at[:N, :N].set(
            a_norm.astype(prop_dtype))

    # --------------------- A-resident fused path -----------------------------
    a_bytes = N_p * N_p * prop_dtype.itemsize
    fused_budget = (32 if big_vmem else 16) * 1024 * 1024
    use_fused = (a_bytes <= fused_budget) and not force_streaming

    if use_fused:
        hT = pl.pallas_call(
            partial(_fused_kernel, prop_step=prop_step, relu=relu,
                    prop_dtype=prop_dtype),
            out_shape=jax.ShapeDtypeStruct((H_p, N_p), jnp.float32),
            compiler_params=pltpu.CompilerParams(
                vmem_limit_bytes=vmem_limit),
        )(xT, w1T, b1c, w2T, b2c, aP)
        return hT[:H, :N].T

    # --------------------- Streaming (tiled) path ----------------------------
    # MLP node tile decoupled from the prop tile (VMEM use per tile is tiny).
    mlp_tile = _pick_tile(N_p, 8192 if big_vmem else 4096)
    hT_dtype = prop_dtype if prop_step > 0 else jnp.float32
    hT = pl.pallas_call(
        partial(_mlp_kernel, apply_relu_out=(relu and prop_step > 0)),
        out_shape=jax.ShapeDtypeStruct((H_p, N_p), hT_dtype),
        grid=(N_p // mlp_tile,),
        in_specs=[
            pl.BlockSpec((Fin_p, mlp_tile), lambda i: (0, i)),   # xT
            pl.BlockSpec((H_p, Fin_p), lambda i: (0, 0)),        # W1T (BN folded)
            pl.BlockSpec((H_p, 1), lambda i: (0, 0)),            # b1'
            pl.BlockSpec((H_p, H_p), lambda i: (0, 0)),          # W2T
            pl.BlockSpec((H_p, 1), lambda i: (0, 0)),            # b2
        ],
        out_specs=pl.BlockSpec((H_p, mlp_tile), lambda i: (0, i)),
        compiler_params=pltpu.CompilerParams(
            dimension_semantics=("parallel",),
            vmem_limit_bytes=vmem_limit),
    )(xT, w1T, b1c, w2T, b2c)

    if prop_step == 0:
        return hT[:H, :N].T.astype(jnp.float32)

    # Propagation tile: as large as the A double-buffer allows per generation.
    max_tile = 2048 if (prop_dtype.itemsize <= 2 or big_vmem) else 1024
    tile_n = _pick_tile(N_p, max_tile)
    # Guarantee >=2 parallel column tiles so both v7x TensorCores stream DMAs.
    if N_p // tile_n < 2 and N_p >= 2 * LANE:
        tile_n = _pick_tile(N_p, N_p // 2)
    n_tiles = N_p // tile_n

    def make_prop(out_dtype, apply_relu_out):
        return pl.pallas_call(
            partial(_prop_kernel, apply_relu_out=apply_relu_out),
            out_shape=jax.ShapeDtypeStruct((H_p, N_p), out_dtype),
            grid=(n_tiles, n_tiles),                    # (out-col j, reduce k)
            in_specs=[
                pl.BlockSpec((H_p, tile_n), lambda j, k: (0, k)),     # hT
                pl.BlockSpec((tile_n, tile_n), lambda j, k: (k, j)),  # A
            ],
            out_specs=pl.BlockSpec((H_p, tile_n), lambda j, k: (0, j)),
            scratch_shapes=[pltpu.VMEM((H_p, tile_n), jnp.float32)],
            compiler_params=pltpu.CompilerParams(
                dimension_semantics=("parallel", "arbitrary"),
                vmem_limit_bytes=vmem_limit),
        )

    prop_mid = make_prop(prop_dtype, apply_relu_out=relu) if prop_step > 1 else None
    prop_last = make_prop(jnp.float32, apply_relu_out=False)
    for _ in range(prop_step - 1):
        hT = prop_mid(hT, aP)
    hT = prop_last(hT, aP)

    return hT[:H, :N].T


# ---------------------------------------------------------------------------
# Parameter / graph construction and a pure-JAX reference.
# ---------------------------------------------------------------------------
def make_params(key, in_feats, h_feats):
    k1, k2, k3, k4 = jax.random.split(key, 4)
    # Linear weights stored as (in, out) == torch weight.T
    w1 = (jax.random.normal(k1, (in_feats, h_feats), jnp.float32)
          / jnp.sqrt(in_feats))
    b1 = 0.01 * jax.random.normal(k2, (h_feats,), jnp.float32)
    w2 = (jax.random.normal(k3, (h_feats, h_feats), jnp.float32)
          / jnp.sqrt(h_feats))
    b2 = 0.01 * jax.random.normal(k4, (h_feats,), jnp.float32)

    # BatchNorm1d eval defaults: gamma=1, beta=0, mean=0, var=1, eps=1e-5
    eps = 1e-5
    gamma = jnp.ones((h_feats,), jnp.float32)
    beta = jnp.zeros((h_feats,), jnp.float32)
    running_mean = jnp.zeros((h_feats,), jnp.float32)
    running_var = jnp.ones((h_feats,), jnp.float32)
    bn_scale = gamma / jnp.sqrt(running_var + eps)
    bn_shift = beta - running_mean * bn_scale
    return dict(w1=w1, b1=b1, w2=w2, b2=b2, bn_scale=bn_scale, bn_shift=bn_shift)


def make_graph(key, n_nodes):
    """Dense symmetric adjacency + 'both' normalization: D^-1/2 A D^-1/2."""
    a = (jax.random.uniform(key, (n_nodes, n_nodes)) < 0.1).astype(jnp.float32)
    a = jnp.maximum(a, a.T)                        # undirected
    deg = jnp.clip(a.sum(axis=1), 1.0, None)       # clamp like DGL
    d_inv_sqrt = 1.0 / jnp.sqrt(deg)
    return d_inv_sqrt[:, None] * a * d_inv_sqrt[None, :]


def reference_forward(x, a_norm, params, *, prop_step=2, relu=False):
    h = x @ params["w1"] + params["b1"]
    h = h * params["bn_scale"] + params["bn_shift"]
    h = jnp.maximum(h, 0.0)
    h = h @ params["w2"] + params["b2"]
    for _ in range(prop_step):
        if relu:
            h = jnp.maximum(h, 0.0)
        h = a_norm @ h
    return h


if __name__ == "__main__":
    IN_FEATS, H_FEATS, PROP_STEP = 32, 64, 2
    key = jax.random.PRNGKey(0)
    kx, kg, kp = jax.random.split(key, 3)
    params = make_params(kp, IN_FEATS, H_FEATS)

    # (N, force_streaming) pairs: fused A-resident path and tiled streaming path.
    for n_nodes, force_streaming in ((128, False), (256, True)):
        x = jax.random.normal(kx, (n_nodes, IN_FEATS), jnp.float32)
        a_norm = make_graph(kg, n_nodes)
        for prop_dtype, tol in ((jnp.bfloat16, 6e-2), (jnp.float32, 2e-2)):
            for use_relu in (False, True):
                out = gcn_no_para_forward(
                    x, a_norm, params, prop_step=PROP_STEP, relu=use_relu,
                    prop_dtype=prop_dtype, force_streaming=force_streaming)
                out = jax.block_until_ready(out)
                ref = reference_forward(x, a_norm, params,
                                        prop_step=PROP_STEP, relu=use_relu)
                assert out.shape == (n_nodes, H_FEATS)
                assert jnp.allclose(out, ref, atol=tol, rtol=tol), (
                    f"mismatch vs JAX reference (N={n_nodes}, relu={use_relu}, "
                    f"dtype={prop_dtype}, streaming={force_streaming}, "
                    f"maxerr={float(jnp.abs(out - ref).max())})")

    print("KERNEL_OK")
</pallas_src>

<mosaic_0001>
module attributes {stable_mosaic.version = 11 : i64} {
  func.func @_fused_kernel(%arg0: memref<32x128xf32, #tpu.memory_space<vmem>>, %arg1: memref<64x32xf32, #tpu.memory_space<vmem>>, %arg2: memref<64x1xf32, #tpu.memory_space<vmem>>, %arg3: memref<64x64xf32, #tpu.memory_space<vmem>>, %arg4: memref<64x1xf32, #tpu.memory_space<vmem>>, %arg5: memref<128x128xbf16, #tpu.memory_space<vmem>>, %arg6: memref<64x128xf32, #tpu.memory_space<vmem>>) attributes {dimension_semantics = [], scalar_prefetch = 0 : i64, scratch_operands = 0 : i64, tpu.core_type = #tpu.core_type<tc>} {
    %c0 = arith.constant 0 : index
    %c0_0 = arith.constant 0 : index
    %0 = vector.load %arg1[%c0, %c0_0] : memref<64x32xf32, #tpu.memory_space<vmem>>, vector<64x32xf32>
    %c0_1 = arith.constant 0 : index
    %c0_2 = arith.constant 0 : index
    %1 = vector.load %arg0[%c0_1, %c0_2] : memref<32x128xf32, #tpu.memory_space<vmem>>, vector<32x128xf32>
    %cst = arith.constant dense<0.000000e+00> : vector<64x128xf32>
    %2 = tpu.matmul %0, %1, %cst {dimension_numbers = #tpu.dot_dimension_numbers<[1], [0], [0], [1], [0, 0, 1, 1], [], []>} : vector<64x32xf32>, vector<32x128xf32>, vector<64x128xf32> -> vector<64x128xf32>
    %c0_3 = arith.constant 0 : index
    %c0_4 = arith.constant 0 : index
    %3 = vector.load %arg2[%c0_3, %c0_4] : memref<64x1xf32, #tpu.memory_space<vmem>>, vector<64x1xf32>
    %4 = vector.broadcast %3 : vector<64x1xf32> to vector<64x128xf32>
    %5 = arith.addf %2, %4 : vector<64x128xf32>
    %cst_5 = arith.constant 0.000000e+00 : f32
    %6 = vector.broadcast %cst_5 : f32 to vector<64x128xf32>
    %7 = arith.maximumf %5, %6 : vector<64x128xf32>
    %c0_6 = arith.constant 0 : index
    %c0_7 = arith.constant 0 : index
    %8 = vector.load %arg3[%c0_6, %c0_7] : memref<64x64xf32, #tpu.memory_space<vmem>>, vector<64x64xf32>
    %cst_8 = arith.constant dense<0.000000e+00> : vector<64x128xf32>
    %9 = tpu.matmul %8, %7, %cst_8 {dimension_numbers = #tpu.dot_dimension_numbers<[1], [0], [0], [1], [0, 0, 1, 1], [], []>} : vector<64x64xf32>, vector<64x128xf32>, vector<64x128xf32> -> vector<64x128xf32>
    %c0_9 = arith.constant 0 : index
    %c0_10 = arith.constant 0 : index
    %10 = vector.load %arg4[%c0_9, %c0_10] : memref<64x1xf32, #tpu.memory_space<vmem>>, vector<64x1xf32>
    %11 = vector.broadcast %10 : vector<64x1xf32> to vector<64x128xf32>
    %12 = arith.addf %9, %11 : vector<64x128xf32>
    %13 = arith.truncf %12 : vector<64x128xf32> to vector<64x128xbf16>
    %c0_11 = arith.constant 0 : index
    %c0_12 = arith.constant 0 : index
    %14 = vector.load %arg5[%c0_11, %c0_12] : memref<128x128xbf16, #tpu.memory_space<vmem>>, vector<128x128xbf16>
    %cst_13 = arith.constant dense<0.000000e+00> : vector<64x128xf32>
    %15 = tpu.matmul %13, %14, %cst_13 {dimension_numbers = #tpu.dot_dimension_numbers<[1], [0], [0], [1], [0, 0, 1, 1], [], []>} : vector<64x128xbf16>, vector<128x128xbf16>, vector<64x128xf32> -> vector<64x128xf32>
    %16 = arith.truncf %15 : vector<64x128xf32> to vector<64x128xbf16>
    %c0_14 = arith.constant 0 : index
    %c0_15 = arith.constant 0 : index
    %17 = vector.load %arg5[%c0_14, %c0_15] : memref<128x128xbf16, #tpu.memory_space<vmem>>, vector<128x128xbf16>
    %cst_16 = arith.constant dense<0.000000e+00> : vector<64x128xf32>
    %18 = tpu.matmul %16, %17, %cst_16 {dimension_numbers = #tpu.dot_dimension_numbers<[1], [0], [0], [1], [0, 0, 1, 1], [], []>} : vector<64x128xbf16>, vector<128x128xbf16>, vector<64x128xf32> -> vector<64x128xf32>
    %c0_17 = arith.constant 0 : index
    %c0_18 = arith.constant 0 : index
    %19 = vector.load %arg6[%c0_17, %c0_18] : memref<64x128xf32, #tpu.memory_space<vmem>>, vector<64x128xf32>
    tpu.vector_store %arg6[%c0_17, %c0_18], %18 {strides = array<i32>} : memref<64x128xf32, #tpu.memory_space<vmem>>, vector<64x128xf32>,
    return
  }
}

</mosaic_0001>

<bundles_post_ra>
// kernel: tpu_custom_call.1
= control target key start
LH: loop header
LB: loop body
LE: loop exit
PB: predicated region body
PF: predicated region fallthrough
CT: control target
= control target key end

     0   :  { %vm85_vm0 = vcmask 261120   ;;  %v869_v6 = vmov 0   ;;  %s1104_s0 = inlined_call_operand.vmem [shape: f32[32,128], index: 0, kind: input, shape index: {}]   ;;  %s1105_s1 = inlined_call_operand.vmem [shape: f32[64,32], index: 1, kind: input, shape index: {}]   ;;  %s1106_s2 = inlined_call_operand.vmem [shape: f32[64,1], index: 2, kind: input, shape index: {}]   ;;  %s1107_s3 = inlined_call_operand.vmem [shape: f32[64,64], index: 3, kind: input, shape index: {}]   ;;  %s1108_s4 = inlined_call_operand.vmem [shape: f32[64,1], index: 4, kind: input, shape index: {}]   ;;  %s1109_s5 = inlined_call_operand.vmem [shape: bf16[128,128], index: 5, kind: input, shape index: {}]   ;;  %s1110_s6 = inlined_call_operand.hbm [shape: f32[64,128], index: 6, kind: output, shape index: {}]  }
   0x1   :  { %v33_v0 = vld [vmem:[%s1104_s0] sm:$0xff]  ;;  %v34_v1 = vld [vmem:[%s1104_s0 + $0x8] sm:$0xff]  ;;  %v35_v2 = vld [vmem:[%s1104_s0 + $0x10] sm:$0xff]  ;;  %835 = vset.pattern.permute.xlu0 %v869_v6  ;;  %836 = vset.pattern.permute.xlu1 %v869_v6 }
   0x2   :  { %v807_v3 = vpack.c.bf16 %v34_v1, %v33_v0  ;;  %v36_v4 = vld [vmem:[%s1104_s0 + $0x18] sm:$0xff]  ;;  %v25_v5 = vld [vmem:[%s1105_s1] sm:$0xff]  ;;  %v39_v9 = vld [vmem:[%s1106_s2 + $0x10] sm:$0xff] }
   0x3   :  { %v811_v7 = vpack.c.bf16 %v36_v4, %v35_v2  ;;  %719 = vmatprep.mubr.msk.f32.mxu0 %vm85_vm0, %v25_v5  ;;  %v37_v8 = vld [vmem:[%s1106_s2] sm:$0xff]  ;;  %57 = vperm.xlu1 %836, %v39_v9   ;;  %v38_v10 = vld [vmem:[%s1106_s2 + $0x8] sm:$0xff]  ;;  %v40_v11 = vld [vmem:[%s1106_s2 + $0x18] sm:$0xff] }
   0x4   :  { %808 = vmatprep.subr.bf16.mxu0 %v807_v3  ;;  %47 = vperm.xlu0 %835, %v37_v8   ;;  %v26_v12 = vld [vmem:[%s1105_s1 + $0x8] sm:$0xff]  ;;  %v27_v13 = vld [vmem:[%s1105_s1 + $0x10] sm:$0xff]  ;;  %v41_v14 = vld [vmem:[%s1106_s2 + $0x20] sm:$0xff] }
   0x5   :  { %810 = vmatpush3.bf16.msra.mxu0 %v807_v3  ;;  %v42_v15 = vld [vmem:[%s1106_s2 + $0x28] sm:$0xff]  ;;  %v28_v16 = vld [vmem:[%s1105_s1 + $0x18] sm:$0xff]  ;;  %v29_v17 = vld [vmem:[%s1105_s1 + $0x20] sm:$0xff] }
   0x6   :  { %812 = vmatprep.subr.bf16.mxu0 %v811_v7  ;;  %v43_v18 = vld [vmem:[%s1106_s2 + $0x30] sm:$0xff] }
   0x7   :  { %62 = vperm.xlu1 %836, %v40_v11  }
   0x8   :  { %52 = vperm.xlu0 %835, %v38_v10  }
   0x9   :  { %814 = vmatpush3.bf16.msra.mxu0 %v811_v7 }
   0xb   :  { %72 = vperm.xlu1 %836, %v42_v15  }
   0xc   :  { %720 = vmatmul.mubr.msk.f32.vlgmr.msra.gmra.mrb[0].mxu0 %vm85_vm0, %v26_v12  ;;  %67 = vperm.xlu0 %835, %v41_v14  }
   0xd   :  { %722 = vmatprep.mubr.msk.f32.mxu0 %vm85_vm0, %v27_v13 }
   0xe   :  { %11 = vsyncpa [#allocation3], 0  ;;  %v44_v19 = vld [vmem:[%s1106_s2 + $0x38] sm:$0xff]  ;;  %v30_v20 = vld [vmem:[%s1105_s1 + $0x28] sm:$0xff]  ;;  %vm279_vm1 = vcmask 523264  }
   0xf   :  { %v31_v21 = vld [vmem:[%s1105_s1 + $0x30] sm:$0xff]  ;;  %82 = vperm.xlu1 %836, %v44_v19   ;;  %v231_v22 = vld [vmem:[%s1108_s4] sm:$0xff]  ;;  %v232_v23 = vld [vmem:[%s1108_s4 + $0x8] sm:$0xff] }
  0x10   :  { %723 = vmatmul.mubr.msk.f32.gmra.mrb[2].mxu0 %vm85_vm0, %v28_v16  ;;  %77 = vperm.xlu0 %835, %v43_v18   ;;  %v32_v24 = vld [vmem:[%s1105_s1 + $0x38] sm:$0xff]  ;;  %v233_v25 = vld [vmem:[%s1108_s4 + $0x10] sm:$0xff]  ;;  %v235_v27 = vld [vmem:[%s1108_s4 + $0x20] sm:$0xff] }
  0x11   :  { %725 = vmatprep.mubr.msk.f32.mxu0 %vm85_vm0, %v29_v17  ;;  %v234_v26 = vld [vmem:[%s1108_s4 + $0x18] sm:$0xff]  ;;  %v236_v28 = vld [vmem:[%s1108_s4 + $0x28] sm:$0xff]  ;;  %v237_v29 = vld [vmem:[%s1108_s4 + $0x30] sm:$0xff] }
  0x12   :  { %v238_v30 = vld [vmem:[%s1108_s4 + $0x38] sm:$0xff]  ;;  %v223_v31 = vld [vmem:[%s1107_s3] sm:$0xff]  ;;  %v1012_v33 = vld [vmem:[%s1109_s5 + $0x8] sm:$0xff]  }
  0x13   :  { %246 = vperm.xlu1 %836, %v232_v23   ;;  %747 = vmatprep.mubr.msk.f32.mxu1 %vm279_vm1, %v223_v31  ;;  %v1007_v32 = vld [vmem:[%s1109_s5] sm:$0xff]   ;;  %v1020_v34 = vld [vmem:[%s1109_s5 + $0x10] sm:$0xff]   ;;  %v1027_v35 = vld [vmem:[%s1109_s5 + $0x18] sm:$0xff]  }
  0x14   :  { %726 = vmatmul.mubr.msk.f32.gmra.mrb[4].mxu0 %vm85_vm0, %v30_v20  ;;  %241 = vperm.xlu0 %835, %v231_v22   ;;  %v1034_v36 = vld [vmem:[%s1109_s5 + $0x20] sm:$0xff]   ;;  %v1041_v37 = vld [vmem:[%s1109_s5 + $0x28] sm:$0xff]   ;;  %v225_v11 = vld [vmem:[%s1107_s3 + $0x10] sm:$0xff] }
  0x15   :  { %728 = vmatprep.mubr.msk.f32.mxu0 %vm85_vm0, %v31_v21  ;;  %759 = vmatprep.subr.bf16.mxu0 %v1007_v32  ;;  %v224_v10 = vld [vmem:[%s1107_s3 + $0x8] sm:$0xff]  ;;  %v226_v12 = vld [vmem:[%s1107_s3 + $0x18] sm:$0xff]  ;;  %v227_v13 = vld [vmem:[%s1107_s3 + $0x20] sm:$0xff] }
  0x16   :  { %760 = vmatpush3.bf16.msra.mxu0 %v1007_v32  ;;  %v228_v14 = vld [vmem:[%s1107_s3 + $0x28] sm:$0xff]  ;;  %v229_v15 = vld [vmem:[%s1107_s3 + $0x30] sm:$0xff]  ;;  %v230_v16 = vld [vmem:[%s1107_s3 + $0x38] sm:$0xff] }
  0x17   :  { %256 = vperm.xlu1 %836, %v234_v26   ;;  %761 = vmatprep.subr.bf16.mxu0 %v1012_v33  ;;  %v843_v17 = vld [vmem:[%s1109_s5 + $0x30] sm:$0xff]   ;;  %v844_v18 = vld [vmem:[%s1109_s5 + $0x38] sm:$0xff]   ;;  %s870_s5 = smov [#allocation2]  }
  0x18   :  { %729 = vmatmul.mubr.msk.f32.gmra.mrb[6].mxu0 %vm85_vm0, %v32_v24  ;;  %251 = vperm.xlu0 %835, %v233_v25   ;;  %s624_s28 = sshll.u32 %s870_s5, 4  ;;  %s625_s28 = int_to_ptr.vmem [resolvable:$true] %s624_s28 }
  0x19   :  { %s845_s29 = scalar_lea.vmem %s625_s28, 1024  ;;  %p850_p1 = scmp.lt.s32.totalorder %s625_s28, %s625_s28 }
  0x1a   :  { %762 = vmatpush3.bf16.msra.mxu0 %v1012_v33  ;;  %p846_p0 = scmp.ne.s32.totalorder %s625_s28, %s845_s29  ;;  %p851_p2 = scmp.lt.s32.totalorder %s845_s29, %s845_s29 }
  0x1b   :  { %266 = vperm.xlu1 %836, %v236_v28   ;;  %763 = vmatprep.subr.bf16.mxu0 %v1020_v34 }
  0x1c   :  { %261 = vperm.xlu0 %835, %v235_v27   ;;  %p852_p3 = por %p851_p2, %p850_p1 }
  0x1e   :  { %764 = vmatpush3.bf16.msra.mxu0 %v1020_v34  ;;  %p853_p4 = pnand %p852_p3, %p846_p0 }
  0x1f   :  { %276 = vperm.xlu1 %836, %v238_v30   ;;  %765 = vmatprep.subr.bf16.mxu0 %v1027_v35 }
  0x20   :  { %271 = vperm.xlu0 %835, %v237_v29  }
  0x22   :  { %766 = vmatpush3.bf16.msra.mxu0 %v1027_v35 }
  0x23   :  { %767 = vmatprep.subr.bf16.mxu0 %v1034_v36 }
  0x26   :  { %768 = vmatpush3.bf16.msra.mxu0 %v1034_v36 }
  0x27   :  { %769 = vmatprep.subr.bf16.mxu0 %v1041_v37 }
  0x2a   :  { %770 = vmatpush3.bf16.msra.mxu0 %v1041_v37 }
  0x2b   :  { %771 = vmatprep.subr.bf16.mxu0 %v843_v17 }
  0x2e   :  { %772 = vmatpush3.bf16.msra.mxu0 %v843_v17 }
  0x2f   :  { %773 = vmatprep.subr.bf16.mxu0 %v844_v18 }
  0x32   :  { %774 = vmatpush3.bf16.msra.mxu0 %v844_v18 }
  0x82   :  { %v58_v39 = vpop.permute.xlu1 %57 }
  0x83   :  { %v48_v38 = vpop.permute.xlu0 %47 }
  0x86   :  { %v63_v41 = vpop.permute.xlu1 %62 }
  0x87   :  { %v53_v40 = vpop.permute.xlu0 %52 }
  0x8a   :  { %v73_v51 = vpop.permute.xlu1 %72 }
  0x8b   :  { %v68_v54 = vpop.permute.xlu0 %67 }
  0x8e   :  { %v83_v63 = vpop.permute.xlu1 %82 }
  0x8f   :  { %v78_v2 = vpop.permute.xlu0 %77 }
  0x92   :  { %v247_v19 = vpop.permute.xlu1 %246 }
  0x93   :  { %v242_v20 = vpop.permute.xlu0 %241 }
  0x96   :  { %v257_v21 = vpop.permute.xlu1 %256 }
  0x97   :  { %v252_v23 = vpop.permute.xlu0 %251 }
  0x9a   :  { %v267_v31 = vpop.permute.xlu1 %266 }
  0xdf   :  { %v721_v42 = vpop.f32.mrb[0].mxu0 }
  0xe0   :  { %v182_v43 = vadd.f32 %v721_v42, %v53_v40  ;;  %v176_v44 = vpop.f32.mrb[1].mxu0 }
  0xe1   :  { %v177_v45 = vadd.f32 %v176_v44, %v48_v38 }
  0xe2   :  { %v216_v46 = vmax.f32 %v182_v43, 0.0 }
  0xe3   :  { %v215_v47 = vmax.f32 %v177_v45, 0.0  ;;  %v724_v48 = vpop.f32.mrb[2].mxu0 }
  0xe4   :  { %v192_v49 = vadd.f32 %v724_v48, %v63_v41  ;;  %v186_v50 = vpop.f32.mrb[3].mxu0 }
  0xe5   :  { %v187_v52 = vadd.f32 %v186_v50, %v58_v39  ;;  %v815_v53 = vpack.c.bf16 %v216_v46, %v215_v47  ;;  %v277_v39 = vpop.permute.xlu1 %276 }
  0xe6   :  { %v218_v55 = vmax.f32 %v192_v49, 0.0 }
  0xe7   :  { %v217_v56 = vmax.f32 %v187_v52, 0.0  ;;  %v727_v57 = vpop.f32.mrb[4].mxu0  ;;  %816 = vmatprep.subr.bf16.mxu1 %v815_v53 }
  0xe8   :  { %v202_v58 = vadd.f32 %v727_v57, %v73_v51  ;;  %v196_v59 = vpop.f32.mrb[5].mxu0  ;;  %818 = vmatpush3.bf16.msra.mxu1 %v815_v53 }
  0xe9   :  { %v819_v60 = vpack.c.bf16 %v218_v55, %v217_v56  ;;  %v197_v61 = vadd.f32 %v196_v59, %v68_v54 }
  0xea   :  { %v220_v62 = vmax.f32 %v202_v58, 0.0 }
  0xeb   :  { %v219_v0 = vmax.f32 %v197_v61, 0.0  ;;  %v730_v1 = vpop.f32.mrb[6].mxu0  ;;  %820 = vmatprep.subr.bf16.mxu1 %v819_v60 }
  0xec   :  { %v212_v3 = vadd.f32 %v730_v1, %v83_v63  ;;  %v206_v4 = vpop.f32.mrb[7].mxu0  ;;  %822 = vmatpush3.bf16.msra.mxu1 %v819_v60 }
  0xed   :  { %v823_v5 = vpack.c.bf16 %v220_v62, %v219_v0  ;;  %v207_v6 = vadd.f32 %v206_v4, %v78_v2 }
  0xee   :  { %v222_v7 = vmax.f32 %v212_v3, 0.0 }
  0xef   :  { %v221_v8 = vmax.f32 %v207_v6, 0.0  ;;  %824 = vmatprep.subr.bf16.mxu1 %v823_v5 }
  0xf0   :  { %826 = vmatpush3.bf16.msra.mxu1 %v823_v5 }
  0xf1   :  { %v827_v9 = vpack.c.bf16 %v222_v7, %v221_v8 }
  0xf3   :  { %828 = vmatprep.subr.bf16.mxu1 %v827_v9 }
  0xf4   :  { %830 = vmatpush3.bf16.msra.mxu1 %v827_v9 }
  0xf5   :  { %783 = vmatprep.subr.bf16.mxu1 %v1007_v32 }
  0xf7   :  { %748 = vmatmul.mubr.msk.f32.vlgmr.msra.gmra.mrb[0].mxu1 %vm279_vm1, %v224_v10 }
  0xf8   :  { %750 = vmatprep.mubr.msk.f32.mxu1 %vm279_vm1, %v225_v11  ;;  %784 = vmatpush3.bf16.msra.mxu1 %v1007_v32 }
  0xf9   :  { %785 = vmatprep.subr.bf16.mxu1 %v1012_v33 }
  0xfb   :  { %751 = vmatmul.mubr.msk.f32.gmra.mrb[2].mxu1 %vm279_vm1, %v226_v12 }
  0xfc   :  { %753 = vmatprep.mubr.msk.f32.mxu1 %vm279_vm1, %v227_v13  ;;  %786 = vmatpush3.bf16.msra.mxu1 %v1012_v33  ;;  %v262_v33 = vpop.permute.xlu0 %261 }
  0xfd   :  { %787 = vmatprep.subr.bf16.mxu1 %v1020_v34 }
  0xff   :  { %754 = vmatmul.mubr.msk.f32.gmra.mrb[4].mxu1 %vm279_vm1, %v228_v14 }
 0x100   :  { %756 = vmatprep.mubr.msk.f32.mxu1 %vm279_vm1, %v229_v15  ;;  %788 = vmatpush3.bf16.msra.mxu1 %v1020_v34  ;;  %v272_v42 = vpop.permute.xlu0 %271 }
 0x101   :  { %789 = vmatprep.subr.bf16.mxu1 %v1027_v35 }
 0x103   :  { %757 = vmatmul.mubr.msk.f32.gmra.mrb[6].mxu1 %vm279_vm1, %v230_v16 }
 0x104   :  { %790 = vmatpush3.bf16.msra.mxu1 %v1027_v35 }
 0x105   :  { %791 = vmatprep.subr.bf16.mxu1 %v1034_v36 }
 0x108   :  { %792 = vmatpush3.bf16.msra.mxu1 %v1034_v36 }
 0x109   :  { %793 = vmatprep.subr.bf16.mxu1 %v1041_v37 }
 0x10c   :  { %794 = vmatpush3.bf16.msra.mxu1 %v1041_v37 }
 0x10d   :  { %795 = vmatprep.subr.bf16.mxu1 %v843_v17 }
 0x110   :  { %796 = vmatpush3.bf16.msra.mxu1 %v843_v17 }
 0x111   :  { %797 = vmatprep.subr.bf16.mxu1 %v844_v18 }
 0x114   :  { %798 = vmatpush3.bf16.msra.mxu1 %v844_v18 }
 0x1ca   :  { %v749_v22 = vpop.f32.mrb[0].mxu1 }
 0x1cb   :  { %v376_v24 = vadd.f32 %v749_v22, %v247_v19  ;;  %v370_v25 = vpop.f32.mrb[1].mxu1 }
 0x1cc   :  { %v371_v26 = vadd.f32 %v370_v25, %v242_v20 }
 0x1ce   :  { %v409_v27 = vpack.c.bf16 %v376_v24, %v371_v26  ;;  %v752_v28 = vpop.f32.mrb[2].mxu1 }
 0x1cf   :  { %v386_v29 = vadd.f32 %v752_v28, %v257_v21  ;;  %v380_v30 = vpop.f32.mrb[3].mxu1 }
 0x1d0   :  { %v381_v32 = vadd.f32 %v380_v30, %v252_v23  ;;  %775 = vmatprep.mubr.bf16.mxu0 %v409_v27 }
 0x1d2   :  { %v410_v34 = vpack.c.bf16 %v386_v29, %v381_v32  ;;  %v755_v35 = vpop.f32.mrb[4].mxu1 }
 0x1d3   :  { %v396_v36 = vadd.f32 %v755_v35, %v267_v31  ;;  %v390_v37 = vpop.f32.mrb[5].mxu1 }
 0x1d4   :  { %v391_v38 = vadd.f32 %v390_v37, %v262_v33  ;;  %776 = vmatmul.mubr.bf16.vlgmr.msra.gmra.mrb[8].mxu0 %v410_v34 }
 0x1d6   :  { %v411_v40 = vpack.c.bf16 %v396_v36, %v391_v38  ;;  %v758_v41 = vpop.f32.mrb[6].mxu1 }
 0x1d7   :  { %v406_v43 = vadd.f32 %v758_v41, %v277_v39  ;;  %v400_v44 = vpop.f32.mrb[7].mxu1 }
 0x1d8   :  { %v401_v45 = vadd.f32 %v400_v44, %v272_v42  ;;  %779 = vmatprep.mubr.bf16.mxu0 %v411_v40 }
 0x1da   :  { %v412_v46 = vpack.c.bf16 %v406_v43, %v401_v45 }
 0x1dc   :  { %780 = vmatmul.mubr.bf16.gmra.mrb[12].mxu0 %v412_v46 }
 0x2a7   :  { %v777_v47 = vpop.f32.mrb[8].mxu0 }
 0x2a8   :  { %v511_v48 = vpop.f32.mrb[9].mxu0 }
 0x2a9   :  { %v778_v49 = vpop.f32.mrb[10].mxu0 }
 0x2aa   :  { %v543_v50 = vpack.c.bf16 %v778_v49, %v777_v47  ;;  %v514_v51 = vpop.f32.mrb[11].mxu0 }
 0x2ab   :  { %v542_v52 = vpack.c.bf16 %v514_v51, %v511_v48 }
 0x2ad   :  { %799 = vmatprep.mubr.bf16.mxu1 %v542_v52 }
 0x2ae   :  { %800 = vmatmul.mubr.bf16.vlgmr.msra.gmra.mrb[8].mxu1 %v543_v50 }
 0x2af   :  { %v781_v53 = vpop.f32.mrb[12].mxu0 }
 0x2b0   :  { %v527_v54 = vpop.f32.mrb[13].mxu0 }
 0x2b1   :  { %v782_v55 = vpop.f32.mrb[14].mxu0 }
 0x2b2   :  { %v545_v56 = vpack.c.bf16 %v782_v55, %v781_v53  ;;  %v530_v57 = vpop.f32.mrb[15].mxu0 }
 0x2b3   :  { %v544_v58 = vpack.c.bf16 %v530_v57, %v527_v54 }
 0x2b5   :  { %803 = vmatprep.mubr.bf16.mxu1 %v544_v58 }
 0x2b6   :  { %804 = vmatmul.mubr.bf16.gmra.mrb[12].mxu1 %v545_v56 }
 0x381   :  { %v801_v59 = vpop.f32.mrb[8].mxu1 }
 0x382   :  { %613 = vst [vmem:[#allocation2 + $0x10] sm:$0xff] %v801_v59  ;;  %v580_v60 = vpop.f32.mrb[9].mxu1 }
 0x383   :  { %611 = vst [vmem:[#allocation2] sm:$0xff] %v580_v60  ;;  %v802_v61 = vpop.f32.mrb[10].mxu1 }
 0x384   :  { %614 = vst [vmem:[#allocation2 + $0x18] sm:$0xff] %v802_v61  ;;  %v583_v62 = vpop.f32.mrb[11].mxu1 }
 0x385   :  { %612 = vst [vmem:[#allocation2 + $0x8] sm:$0xff] %v583_v62 }
 0x389   :  { %v805_v63 = vpop.f32.mrb[12].mxu1 }
 0x38a   :  { %617 = vst [vmem:[#allocation2 + $0x30] sm:$0xff] %v805_v63  ;;  %v596_v0 = vpop.f32.mrb[13].mxu1 }
 0x38b   :  { %615 = vst [vmem:[#allocation2 + $0x20] sm:$0xff] %v596_v0  ;;  %v806_v1 = vpop.f32.mrb[14].mxu1 }
 0x38c   :  { %618 = vst [vmem:[#allocation2 + $0x38] sm:$0xff] %v806_v1  ;;  %v599_v2 = vpop.f32.mrb[15].mxu1 }
 0x38d   :  { %616 = vst [vmem:[#allocation2 + $0x28] sm:$0xff] %v599_v2 }
 0x38e   :  { %856 = shalt.err (!%p853_p4)
}
 0x38f   :  { %s857_s7 = scalar_lea.hbm %s1110_s6, 1024 }
 0x390   :  { %p858_p5 = scmp.ne.s32.totalorder %s1110_s6, %s857_s7  ;;  %p861_p6 = scmp.lt.u32.totalorder %s857_s7, %s1110_s6 }
 0x392   :  { %p863_p7 = pnand %p861_p6, %p858_p5 }
 0x394   :  { %866 = shalt.err (!%p863_p7)
}
 0x395   :  { %s871_s11 = smov 128   ;;  %s872_s2 = smov 8  }
 0x396   :  { %630 = dma.vmem_to_hbm [thread:$0]  %s625_s28, 1024, %s1110_s6, [#allocation3], %s871_s11, %s871_s11, %s872_s2  }
 0x397   :  { %867 = dma.done.wait [#allocation3], 1024  }
 0x398   :  { %868 = vsyncadd [#allocation3], 4294966272 }
 0x399   :  { %634 = vsyncpa [#allocation3], 1 }

</bundles_post_ra>
